<compile_context>
chip_gen: v5e
topology: v5e:2x2
jax: 0.10.0
libtpu: 0.0.40
codegen_flags: <defaults>
</compile_context>

<pallas_src>
import functools
import math

import jax
import jax.numpy as jnp
from jax import lax
from jax.experimental import pallas as pl
from jax.experimental.pallas import tpu as pltpu


def _attention_head_kernel(x_ref, w_ref, b_ref, o_ref, *, bt, s, hp, head_dim):
    """x_ref: (bt*s, E) slab; w_ref: (E, 3*hp); b_ref: (1, 3*hp); o_ref: (bt*s, hp)."""
    x = x_ref[...]

    # Fused QKV projection: one (bt*s, E) x (E, 3*hp) MXU matmul + one bias add.
    qkv = jnp.dot(x, w_ref[...], preferred_element_type=jnp.float32) + b_ref[...]

    scale = 1.0 / math.sqrt(head_dim)   # real (unpadded) head dim

    # Per-batch-element attention (bt is a small compile-time constant; static
    # unroll keeps everything as simple 2-D, tile-aligned slices).
    for b in range(bt):
        rows = slice(b * s, (b + 1) * s)
        q = qkv[rows, 0 * hp:1 * hp]            # (s, hp)
        k = qkv[rows, 1 * hp:2 * hp]            # (s, hp)
        v = qkv[rows, 2 * hp:3 * hp]            # (s, hp)

        # q @ k^T with the transpose folded into the MXU (no XLU transpose).
        scores = lax.dot_general(
            q, k, dimension_numbers=(((1,), (1,)), ((), ())),
            preferred_element_type=jnp.float32) * scale          # (s, s)

        # Numerically stable softmax; denominator reciprocal on the EUP.
        scores = scores - jnp.max(scores, axis=-1, keepdims=True)
        p = jnp.exp(scores)
        weights = p * pl.reciprocal(jnp.sum(p, axis=-1, keepdims=True), approx=True)

        o_ref[rows, :] = jnp.dot(
            weights, v, preferred_element_type=jnp.float32).astype(o_ref.dtype)


def _pick_block_b(B, S, E, hp, itemsize):
    """Largest divisor of B whose per-step working set stays small in VMEM."""
    budget = 4 * 1024 * 1024
    best = 1
    for bt in range(1, B + 1):
        if B % bt:
            continue
        rows = bt * S
        if bt != B and rows % 8 != 0:   # non-full blocks must be sublane aligned
            continue
        work = rows * (E + 4 * hp) * itemsize * 2   # x + qkv + out, ~double-buffered
        if work <= budget:
            best = bt
    return best


def attention_head(hidden_state, wq, bq, wk, bk, wv, bv, *, block_b=None):
    """hidden_state: (B, S, E); wq/wk/wv: (E, H); bq/bk/bv: (1, H) -> (B, S, H)."""
    B, S, E = hidden_state.shape
    H = wq.shape[1]
    dtype = hidden_state.dtype

    # Lane-dense (padded) head dim so every matmul/store is full 128-lane width.
    Hp = ((H + 127) // 128) * 128

    def pad_cols(a):
        return jnp.pad(a, ((0, 0), (0, Hp - H)))

    # Fused + padded QKV parameters: (E, 3*Hp) weight, (1, 3*Hp) bias.
    w_qkv = jnp.concatenate([pad_cols(wq), pad_cols(wk), pad_cols(wv)], axis=1).astype(dtype)
    b_qkv = jnp.concatenate([pad_cols(bq), pad_cols(bk), pad_cols(bv)], axis=1).astype(dtype)

    if block_b is None:
        block_b = _pick_block_b(B, S, E, Hp, jnp.dtype(dtype).itemsize)
    Bt = block_b
    assert B % Bt == 0, "block_b must divide the batch"
    R = Bt * S                       # rows per grid step

    x2d = hidden_state.reshape(B * S, E)

    kernel = functools.partial(_attention_head_kernel, bt=Bt, s=S, hp=Hp, head_dim=H)

    out2d = pl.pallas_call(
        kernel,
        out_shape=jax.ShapeDtypeStruct((B * S, Hp), dtype),
        grid_spec=pltpu.PrefetchScalarGridSpec(
            num_scalar_prefetch=0,
            grid=(B // Bt,),
            in_specs=[
                pl.BlockSpec((R, E), lambda i: (i, 0)),           # activations
                pl.BlockSpec((E, 3 * Hp), lambda i: (0, 0)),      # fused QKV weight
                pl.BlockSpec((1, 3 * Hp), lambda i: (0, 0)),      # fused QKV bias
            ],
            out_specs=pl.BlockSpec((R, Hp), lambda i: (i, 0)),
        ),
        compiler_params=pltpu.CompilerParams(
            dimension_semantics=("parallel",)),
    )(x2d, w_qkv, b_qkv)

    # Strip the lane padding and restore the (B, S, H) layout.
    return out2d[:, :H].reshape(B, S, H)


def _reference(hidden_state, wq, bq, wk, bk, wv, bv):
    q = hidden_state @ wq + bq
    k = hidden_state @ wk + bk
    v = hidden_state @ wv + bv
    scores = jnp.einsum("bqd,bkd->bqk", q, k) / math.sqrt(q.shape[-1])
    w = jax.nn.softmax(scores, axis=-1)
    return jnp.einsum("bqk,bkd->bqd", w, v)


if __name__ == "__main__":
    # Small shapes consistent with the module: batch=2, seq=8, embed_dim=32, head_dim=16
    B, S, E, H = 2, 8, 32, 16
    key = jax.random.PRNGKey(0)
    k_x, k_q, k_k, k_v, k_bq, k_bk, k_bv = jax.random.split(key, 7)

    hidden_state = jax.random.normal(k_x, (B, S, E), dtype=jnp.float32)

    # nn.Linear-style uniform init (bound = 1/sqrt(fan_in)); weights stored
    # pre-transposed as (E, H).
    bound = 1.0 / math.sqrt(E)
    wq = jax.random.uniform(k_q, (E, H), jnp.float32, -bound, bound)
    wk = jax.random.uniform(k_k, (E, H), jnp.float32, -bound, bound)
    wv = jax.random.uniform(k_v, (E, H), jnp.float32, -bound, bound)
    bq = jax.random.uniform(k_bq, (1, H), jnp.float32, -bound, bound)
    bk = jax.random.uniform(k_bk, (1, H), jnp.float32, -bound, bound)
    bv = jax.random.uniform(k_bv, (1, H), jnp.float32, -bound, bound)

    out = attention_head(hidden_state, wq, bq, wk, bk, wv, bv)
    out = jax.block_until_ready(out)

    ref = _reference(hidden_state, wq, bq, wk, bk, wv, bv)
    assert out.shape == (B, S, H)
    # Tolerance slightly relaxed vs 1e-5 to cover the EUP approximate
    # reciprocal used for the softmax denominator.
    assert jnp.allclose(out, ref, atol=2e-3, rtol=2e-3), "mismatch vs pure-JAX reference"

    print("KERNEL_OK")
</pallas_src>

<mosaic_0001>
module attributes {stable_mosaic.version = 11 : i64} {
  func.func @_attention_head_kernel(%arg0: i32, %arg1: memref<16x32xf32, #tpu.memory_space<vmem>>, %arg2: memref<32x384xf32, #tpu.memory_space<vmem>>, %arg3: memref<1x384xf32, #tpu.memory_space<vmem>>, %arg4: memref<16x128xf32, #tpu.memory_space<vmem>>) attributes {dimension_semantics = [#tpu.dimension_semantics<parallel>], iteration_bounds = array<i64: 1>, scalar_prefetch = 0 : i64, scratch_operands = 0 : i64, tpu.core_type = #tpu.core_type<tc>, window_params = [{transform_indices = @transform_0, window_bounds = array<i64: 16, 32>}, {pipeline_mode = #tpu.pipeline_mode<synchronous>, transform_indices = @transform_1, window_bounds = array<i64: 32, 384>}, {pipeline_mode = #tpu.pipeline_mode<synchronous>, transform_indices = @transform_2, window_bounds = array<i64: 1, 384>}, {transform_indices = @transform_3, window_bounds = array<i64: 16, 128>}]} {
    %c0 = arith.constant 0 : index
    %c0_0 = arith.constant 0 : index
    %0 = vector.load %arg1[%c0, %c0_0] : memref<16x32xf32, #tpu.memory_space<vmem>>, vector<16x32xf32>
    %c0_1 = arith.constant 0 : index
    %c0_2 = arith.constant 0 : index
    %1 = vector.load %arg2[%c0_1, %c0_2] : memref<32x384xf32, #tpu.memory_space<vmem>>, vector<32x384xf32>
    %cst = arith.constant dense<0.000000e+00> : vector<16x384xf32>
    %2 = tpu.matmul %0, %1, %cst {dimension_numbers = #tpu.dot_dimension_numbers<[1], [0], [0], [1], [0, 0, 1, 1], [], []>} : vector<16x32xf32>, vector<32x384xf32>, vector<16x384xf32> -> vector<16x384xf32>
    %c0_3 = arith.constant 0 : index
    %c0_4 = arith.constant 0 : index
    %3 = vector.load %arg3[%c0_3, %c0_4] : memref<1x384xf32, #tpu.memory_space<vmem>>, vector<1x384xf32>
    %4 = vector.broadcast %3 : vector<1x384xf32> to vector<16x384xf32>
    %5 = arith.addf %2, %4 : vector<16x384xf32>
    %6 = vector.extract_strided_slice %5 {offsets = [0, 0], sizes = [8, 128], strides = [1, 1]} : vector<16x384xf32> to vector<8x128xf32>
    %7 = vector.extract_strided_slice %5 {offsets = [0, 128], sizes = [8, 128], strides = [1, 1]} : vector<16x384xf32> to vector<8x128xf32>
    %8 = vector.extract_strided_slice %5 {offsets = [0, 256], sizes = [8, 128], strides = [1, 1]} : vector<16x384xf32> to vector<8x128xf32>
    %cst_5 = arith.constant dense<0.000000e+00> : vector<8x8xf32>
    %9 = tpu.matmul %6, %7, %cst_5 {dimension_numbers = #tpu.dot_dimension_numbers<[1], [1], [0], [0], [0, 0, 1, 0], [], []>} : vector<8x128xf32>, vector<8x128xf32>, vector<8x8xf32> -> vector<8x8xf32>
    %cst_6 = arith.constant 2.500000e-01 : f32
    %10 = vector.broadcast %cst_6 : f32 to vector<8x8xf32>
    %11 = arith.mulf %9, %10 : vector<8x8xf32>
    %cst_7 = arith.constant dense<0xFF800000> : vector<8xf32>
    %12 = vector.multi_reduction <maximumf>, %11, %cst_7 [1] : vector<8x8xf32> to vector<8xf32>
    %13 = vector.shape_cast %12 : vector<8xf32> to vector<8x1xf32>
    %14 = vector.broadcast %13 : vector<8x1xf32> to vector<8x8xf32>
    %15 = arith.subf %11, %14 : vector<8x8xf32>
    %16 = math.exp %15 : vector<8x8xf32>
    %cst_8 = arith.constant dense<0.000000e+00> : vector<8xf32>
    %17 = vector.multi_reduction <add>, %16, %cst_8 [1] : vector<8x8xf32> to vector<8xf32>
    %18 = vector.shape_cast %17 : vector<8xf32> to vector<8x1xf32>
    %19 = tpu.reciprocal %18 {approx = true} : vector<8x1xf32> -> vector<8x1xf32>
    %20 = vector.broadcast %19 : vector<8x1xf32> to vector<8x8xf32>
    %21 = arith.mulf %16, %20 : vector<8x8xf32>
    %cst_9 = arith.constant dense<0.000000e+00> : vector<8x128xf32>
    %22 = tpu.matmul %21, %8, %cst_9 {dimension_numbers = #tpu.dot_dimension_numbers<[1], [0], [0], [1], [0, 0, 1, 1], [], []>} : vector<8x8xf32>, vector<8x128xf32>, vector<8x128xf32> -> vector<8x128xf32>
    %c0_10 = arith.constant 0 : index
    %c0_11 = arith.constant 0 : index
    %23 = vector.load %arg4[%c0_10, %c0_11] : memref<16x128xf32, #tpu.memory_space<vmem>>, vector<8x128xf32>
    tpu.vector_store %arg4[%c0_10, %c0_11], %22 {strides = array<i32>} : memref<16x128xf32, #tpu.memory_space<vmem>>, vector<8x128xf32>,
    %24 = vector.extract_strided_slice %5 {offsets = [8, 0], sizes = [8, 128], strides = [1, 1]} : vector<16x384xf32> to vector<8x128xf32>
    %25 = vector.extract_strided_slice %5 {offsets = [8, 128], sizes = [8, 128], strides = [1, 1]} : vector<16x384xf32> to vector<8x128xf32>
    %26 = vector.extract_strided_slice %5 {offsets = [8, 256], sizes = [8, 128], strides = [1, 1]} : vector<16x384xf32> to vector<8x128xf32>
    %cst_12 = arith.constant dense<0.000000e+00> : vector<8x8xf32>
    %27 = tpu.matmul %24, %25, %cst_12 {dimension_numbers = #tpu.dot_dimension_numbers<[1], [1], [0], [0], [0, 0, 1, 0], [], []>} : vector<8x128xf32>, vector<8x128xf32>, vector<8x8xf32> -> vector<8x8xf32>
    %cst_13 = arith.constant 2.500000e-01 : f32
    %28 = vector.broadcast %cst_13 : f32 to vector<8x8xf32>
    %29 = arith.mulf %27, %28 : vector<8x8xf32>
    %cst_14 = arith.constant dense<0xFF800000> : vector<8xf32>
    %30 = vector.multi_reduction <maximumf>, %29, %cst_14 [1] : vector<8x8xf32> to vector<8xf32>
    %31 = vector.shape_cast %30 : vector<8xf32> to vector<8x1xf32>
    %32 = vector.broadcast %31 : vector<8x1xf32> to vector<8x8xf32>
    %33 = arith.subf %29, %32 : vector<8x8xf32>
    %34 = math.exp %33 : vector<8x8xf32>
    %cst_15 = arith.constant dense<0.000000e+00> : vector<8xf32>
    %35 = vector.multi_reduction <add>, %34, %cst_15 [1] : vector<8x8xf32> to vector<8xf32>
    %36 = vector.shape_cast %35 : vector<8xf32> to vector<8x1xf32>
    %37 = tpu.reciprocal %36 {approx = true} : vector<8x1xf32> -> vector<8x1xf32>
    %38 = vector.broadcast %37 : vector<8x1xf32> to vector<8x8xf32>
    %39 = arith.mulf %34, %38 : vector<8x8xf32>
    %cst_16 = arith.constant dense<0.000000e+00> : vector<8x128xf32>
    %40 = tpu.matmul %39, %26, %cst_16 {dimension_numbers = #tpu.dot_dimension_numbers<[1], [0], [0], [1], [0, 0, 1, 1], [], []>} : vector<8x8xf32>, vector<8x128xf32>, vector<8x128xf32> -> vector<8x128xf32>
    %c8 = arith.constant 8 : index
    %c0_17 = arith.constant 0 : index
    %41 = vector.load %arg4[%c8, %c0_17] : memref<16x128xf32, #tpu.memory_space<vmem>>, vector<8x128xf32>
    tpu.vector_store %arg4[%c8, %c0_17], %40 {strides = array<i32>} : memref<16x128xf32, #tpu.memory_space<vmem>>, vector<8x128xf32>,
    return
  }
  func.func @transform_0(%arg0: i32) -> (i32, i32) {
    %c0_i32 = arith.constant 0 : i32
    %c0_i32_0 = arith.constant 0 : i32
    return %arg0, %c0_i32 : i32, i32
  }
  func.func @transform_1(%arg0: i32) -> (i32, i32) {
    %c0_i32 = arith.constant 0 : i32
    %c0_i32_0 = arith.constant 0 : i32
    %c0_i32_1 = arith.constant 0 : i32
    return %c0_i32, %c0_i32_0 : i32, i32
  }
  func.func @transform_2(%arg0: i32) -> (i32, i32) {
    %c0_i32 = arith.constant 0 : i32
    %c0_i32_0 = arith.constant 0 : i32
    %c0_i32_1 = arith.constant 0 : i32
    return %c0_i32, %c0_i32_0 : i32, i32
  }
  func.func @transform_3(%arg0: i32) -> (i32, i32) {
    %c0_i32 = arith.constant 0 : i32
    %c0_i32_0 = arith.constant 0 : i32
    return %arg0, %c0_i32 : i32, i32
  }
}

</mosaic_0001>

<bundles_post_ra>
// kernel: tpu_custom_call.1
= control target key start
LH: loop header
LB: loop body
LE: loop exit
PB: predicated region body
PF: predicated region fallthrough
CT: control target
= control target key end

     0   :  { %8 = vsyncpa [#allocation3], 0  ;;  %s475_s0 = inlined_call_operand.hbm [shape: f32[16,32], index: 0, kind: input, shape index: {}]   ;;  %s476_s1 = inlined_call_operand.hbm [shape: f32[32,384], index: 1, kind: input, shape index: {}]   ;;  %s477_s2 = inlined_call_operand.hbm [shape: f32[1,384], index: 2, kind: input, shape index: {}]   ;;  %s478_s3 = inlined_call_operand.hbm [shape: f32[16,128], index: 3, kind: output, shape index: {}]  }
   0x1   :  { %9 = vsyncpa [#allocation6], 0  ;;  %s28_s14 = sshll.u32 %s476_s1, 4  ;;  %s29_s14 = int_to_ptr.hbm [resolvable:$true] %s28_s14 }
   0x2   :  { %10 = vsyncpa [#allocation4], 0  ;;  %s417_s15 = smov [#allocation5]   ;;  %s15_s19 = sshll.u32 %s475_s0, 4  ;;  %s16_s19 = int_to_ptr.hbm [resolvable:$true] %s15_s19 }
   0x3   :  { %s30_s16 = sshll.u32 %s417_s15, 4  ;;  %s418_s20 = smov 384   ;;  %s31_s16 = int_to_ptr.vmem [resolvable:$true] %s30_s16 }
   0x4   :  { %s419_s21 = smov 24   ;;  %s420_s22 = smov [#allocation2]  }
   0x5   :  { %36 = dma.hbm_to_vmem [thread:$0]  %s29_s14, 1536, %s31_s16, [#allocation6], %s418_s20, %s418_s20, %s419_s21  }
   0x6   :  { %s17_s23 = sshll.u32 %s420_s22, 4  ;;  %s421_s24 = smov 128   ;;  %s18_s23 = int_to_ptr.vmem [resolvable:$true] %s17_s23 }
   0x7   :  { %s422_s25 = smov 8   ;;  %s42_s27 = sshll.u32 %s477_s2, 4  ;;  %s43_s27 = int_to_ptr.hbm [resolvable:$true] %s42_s27 }
   0x8   :  { %23 = dma.hbm_to_vmem [thread:$0]  %s16_s19, 256, %s18_s23, [#allocation3], %s421_s24, %s421_s24, %s422_s25  }
   0x9   :  { %s423_s28 = smov [#allocation7]  }
   0xa   :  { %s44_s0 = sshll.u32 %s423_s28, 4  ;;  %s45_s0 = int_to_ptr.vmem [resolvable:$true] %s44_s0 }
   0xb   :  { %47 = dma.hbm_to_vmem [thread:$0]  %s43_s27, 48, %s45_s0, [#allocation6]  }
   0xc   :  { %411 = dma.done.wait [#allocation3], 256  }
   0xd   :  { %412 = vsyncadd [#allocation3], 4294967040 }
   0xe   :  { %413 = dma.done.wait [#allocation6], 1584  }
   0xf   :  { %414 = vsyncadd [#allocation6], 4294965712  ;;  %v72_v0 = vld [vmem:[#allocation5 + $0x50] sm:$0xff]  ;;  %v69_v1 = vld [vmem:[#allocation5 + $0x38] sm:$0xff]  ;;  %vm82_vm0 = vcmask 261120   ;;  %vm179_vm1 = vcmask 64512  }
  0x10   :  { %v71_v2 = vld [vmem:[#allocation5 + $0x48] sm:$0xff]  ;;  %124 = vmatpush.msra.mxu1 %v72_v0  ;;  %v68_v3 = vld [vmem:[#allocation5 + $0x30] sm:$0xff]  ;;  %v66_v4 = vld [vmem:[#allocation5 + $0x20] sm:$0xff]  ;;  %s424_s2 = smov [#allocation8]   ;;  %s277_s5 = sshll.u32 %s478_s3, 4  ;;  %s278_s5 = int_to_ptr.hbm [resolvable:$true] %s277_s5 }
  0x11   :  { %101 = vmatpush.msra.mxu0 %v71_v2  ;;  %v65_v5 = vld [vmem:[#allocation5 + $0x18] sm:$0xff]  ;;  %v63_v6 = vld [vmem:[#allocation5 + $0x8] sm:$0xff]  ;;  %v62_v7 = vld [vmem:[#allocation5] sm:$0xff]  ;;  %s275_s29 = sshll.u32 %s424_s2, 4  ;;  %s276_s29 = int_to_ptr.vmem [resolvable:$true] %s275_s29 }
  0x12   :  { %125 = vmatpush.msra.mxu1 %v69_v1  ;;  %v60_v8 = vld [vmem:[#allocation2] sm:$0xff]  ;;  %v74_v9 = vld [vmem:[#allocation7] sm:$0x7]  ;;  %v73_v16 = vld [vmem:[#allocation5 + $0x58] sm:$0xff] }
  0x13   :  { %102 = vmatpush.msra.mxu0 %v68_v3  ;;  %v77_v10 = vperm.slane %v74_v9, 1  ;;  %v76_v11 = vperm.slane %v74_v9, 0  ;;  %v70_v17 = vld [vmem:[#allocation5 + $0x40] sm:$0xff]  ;;  %147 = vmatpush.msra.mxu2 %v73_v16  ;;  %v67_v18 = vld [vmem:[#allocation5 + $0x28] sm:$0xff]  ;;  %v64_v19 = vld [vmem:[#allocation5 + $0x10] sm:$0xff]  ;;  %v78_v24 = vperm.slane %v74_v9, 2 }
  0x14   :  { %126 = vmatpush.msra.mxu1 %v66_v4  ;;  %v61_v23 = vld [vmem:[#allocation2 + $0x8] sm:$0xff] }
  0x15   :  { %103 = vmatpush.msra.mxu0 %v65_v5  ;;  %148 = vmatpush.msra.mxu2 %v70_v17 }
  0x16   :  { %127 = vmatpush.msra.mxu1 %v63_v6 }
  0x17   :  { %104 = vmatpush.msra.mxu0 %v62_v7  ;;  %293 = vmatmul.msk.f32.vlgmr.msra.gmra.mxu1 %vm82_vm0, %v60_v8 }
  0x18   :  { %291 = vmatmul.msk.f32.vlgmr.msra.gmra.mxu0 %vm82_vm0, %v60_v8  ;;  %149 = vmatpush.msra.mxu2 %v67_v18 }
  0x1a   :  { %150 = vmatpush.msra.mxu2 %v64_v19 }
  0x1b   :  { %295 = vmatmul.msk.f32.vlgmr.msra.gmra.mxu2 %vm82_vm0, %v60_v8 }
  0x1f   :  { %294 = vmatmul.msk.f32.gmra.mxu1 %vm82_vm0, %v61_v23 }
  0x20   :  { %292 = vmatmul.msk.f32.gmra.mxu0 %vm82_vm0, %v61_v23 }
  0x23   :  { %296 = vmatmul.msk.f32.gmra.mxu2 %vm82_vm0, %v61_v23 }
  0x94   :  { %v129_v12 = vpop.f32.mrf.mxu1 }
  0x95   :  { %v106_v13 = vpop.f32.mrf.mxu0  ;;  %v130_v14 = vadd.f32 %v129_v12, %v77_v10 }
  0x96   :  { %v107_v15 = vadd.f32 %v106_v13, %v76_v11 }
  0x97   :  { %173 = vmatpush.xpose.msra.mxu3 %v130_v14 }
  0x9a   :  { %174 = vmatmul.f32.vlgmr.msra.gmra.mxu3 %v107_v15 }
  0x9c   :  { %v132_v32 = vpop.f32.mrf.mxu1 }
  0x9d   :  { %v133_v33 = vadd.f32 %v132_v32, %v77_v10  ;;  %v109_v37 = vpop.f32.mrf.mxu0 }
  0x9e   :  { %v152_v25 = vpop.f32.mrf.mxu2  ;;  %v110_v38 = vadd.f32 %v109_v37, %v76_v11 }
  0x9f   :  { %v153_v26 = vadd.f32 %v152_v25, %v78_v24 }
  0xa1   :  { %209 = vmatpush.msrb.mxu3 %v153_v26 }
  0xa3   :  { %230 = vmatpush.xpose.msra.mxu3 %v133_v33 }
  0xa6   :  { %v155_v43 = vpop.f32.mrf.mxu2 }
  0xa7   :  { %v156_v44 = vadd.f32 %v155_v43, %v78_v24 }
  0xa9   :  { %265 = vmatpush.msrb.mxu0 %v156_v44 }
 0x11d   :  { %v175_v20 = vpop.f32.mrf.mxu3 }
 0x11e   :  { %v178_v21 = vmul.f32 0.25, %v175_v20 }
 0x120   :  { %v180_v22 = vsel %vm179_vm1, %v178_v21, -inf }
 0x121   :  { %181 = vmax.xlane.f32.xlu0 %v180_v22 }
 0x194   :  { %v182_v27 = vpop.xlane.xlu0 %181 }
 0x195   :  { %v183_v28 = vsub.f32 %v178_v21, %v182_v27 }
 0x197   :  { %v184_v29 = vmul.f32 1.442695, %v183_v28 }
 0x199   :  { %307 = vpow2.f32 %v184_v29 }
 0x19f   :  { %v308_v30 = vpop.eup %307 }
 0x1a0   :  { %v186_v31 = vsel %vm179_vm1, %v308_v30, 0.0 }
 0x1a1   :  { %187 = vadd.xlane.f32.xlu0 %v186_v31 }
 0x214   :  { %v188_v34 = vpop.xlane.xlu0 %187 }
 0x215   :  { %309 = vrcp.f32 %v188_v34 }
 0x21b   :  { %v310_v35 = vpop.eup %309 }
 0x21c   :  { %v190_v36 = vmul.f32 %v310_v35, %v308_v30 }
 0x21e   :  { %297 = vmatmul.msk.f32.vlgmr.msrb.gmra.mxu3 %vm179_vm1, %v190_v36 }
 0x226   :  { %231 = vmatmul.f32.vlgmr.msra.gmra.mxu3 %v110_v38 }
 0x2a1   :  { %v211_v39 = vpop.f32.mrf.mxu3 }
 0x2a2   :  { %214 = vst [vmem:[#allocation8] sm:$0xff] %v211_v39 }
 0x2a9   :  { %v232_v40 = vpop.f32.mrf.mxu3 }
 0x2aa   :  { %v235_v41 = vmul.f32 0.25, %v232_v40 }
 0x2ac   :  { %v236_v42 = vsel %vm179_vm1, %v235_v41, -inf }
 0x2ad   :  { %237 = vmax.xlane.f32.xlu1 %v236_v42 }
 0x320   :  { %v238_v45 = vpop.xlane.xlu1 %237 }
 0x321   :  { %v239_v46 = vsub.f32 %v235_v41, %v238_v45 }
 0x323   :  { %v240_v47 = vmul.f32 1.442695, %v239_v46 }
 0x325   :  { %311 = vpow2.f32 %v240_v47 }
 0x32b   :  { %v312_v48 = vpop.eup %311 }
 0x32c   :  { %v242_v49 = vsel %vm179_vm1, %v312_v48, 0.0 }
 0x32d   :  { %243 = vadd.xlane.f32.xlu1 %v242_v49 }
 0x3a0   :  { %v244_v50 = vpop.xlane.xlu1 %243 }
 0x3a1   :  { %313 = vrcp.f32 %v244_v50 }
 0x3a7   :  { %v314_v51 = vpop.eup %313 }
 0x3a8   :  { %v246_v52 = vmul.f32 %v314_v51, %v312_v48 }
 0x3aa   :  { %298 = vmatmul.msk.f32.vlgmr.msrb.gmra.mxu0 %vm179_vm1, %v246_v52 }
 0x427   :  { %v267_v53 = vpop.f32.mrf.mxu0 }
 0x428   :  { %270 = vst [vmem:[#allocation8 + $0x8] sm:$0xff] %v267_v53 }
 0x429   :  { %283 = dma.vmem_to_hbm [thread:$0]  %s276_s29, 256, %s278_s5, [#allocation4], %s421_s24, %s421_s24, %s422_s25  }
 0x42a   :  { %415 = dma.done.wait [#allocation4], 256  }
 0x42b   :  { %416 = vsyncadd [#allocation4], 4294967040 }
 0x42c   :  { %288 = vsyncpa [#allocation3], 1 }
 0x42d   :  { %289 = vsyncpa [#allocation6], 1 }
 0x42e   :  { %290 = vsyncpa [#allocation4], 1 }

</bundles_post_ra>
